<compile_context>
chip_gen: v7x
topology: tpu7x:2x2x1
jax: 0.10.0
libtpu: 0.0.40
codegen_flags: <defaults>
</compile_context>

<pallas_src>
import jax
import jax.numpy as jnp
from jax.experimental import pallas as pl
from jax.experimental.pallas import tpu as pltpu

# ---------------- model sizes (small, consistent with the module) ----------
HIDDEN = 32                                     # hidden_size
VOCAB = 50                                      # voc.num_words == output_size
OUTPUT = VOCAB
OUT_PAD = 128 * ((OUTPUT + 127) // 128)         # lane-dense padded logits (=128)
GATE_PAD = 128 * ((3 * HIDDEN + 127) // 128)    # fused r|z|n gate lanes (=128)
BATCH = 2
SEQ = 8                                         # encoder max length
N_LAYERS = 1
STEPS = 6                                       # decode steps run in one kernel
NEG_BIG = -1e30                                 # softmax mask for padded lanes (f32 only)


def decode_kernel(ids_ref,                       # (T, B) int32, SMEM (scalar prefetch)
                  emb_ref, enc_ref, h0_ref,      # (V,H) (B,S,H) (B,H)   VMEM-resident
                  wih_ref, whh_ref, gb_ref,      # (H,GP) (H,GP) (2,GP)
                  wc_ref, bc_ref, wo_ref, bo_ref,  # (2,H,H) (1,H) (H,OP) (1,OP)
                  out_ref, hout_ref,             # (1,B,OP) per-step, (B,H) final
                  h_scr):                        # (B,H) VMEM scratch: carried hidden
    f32 = jnp.float32
    H = HIDDEN
    t = pl.program_id(0)

    @pl.when(t == 0)
    def _init():
        h_scr[...] = h0_ref[...]

    h = h_scr[...]                                          # (B, H)

    # ---- in-kernel embedding gather: token ids live in SMEM, table in VMEM ----
    x = jnp.concatenate(
        [emb_ref[pl.ds(ids_ref[t, b], 1), :] for b in range(BATCH)], axis=0)  # (B, H)

    # ---- GRU step: two fused lane-dense gate matmuls, gates r|z|n on lanes ----
    gi = jnp.dot(x, wih_ref[...], preferred_element_type=f32) + gb_ref[0:1, :]
    gh = jnp.dot(h, whh_ref[...], preferred_element_type=f32) + gb_ref[1:2, :]
    r = jax.nn.sigmoid(gi[:, 0:H] + gh[:, 0:H])
    z = jax.nn.sigmoid(gi[:, H:2 * H] + gh[:, H:2 * H])
    n = jnp.tanh(gi[:, 2 * H:3 * H] + r * gh[:, 2 * H:3 * H])
    h_new = (1.0 - z) * n + z * h                           # (B, H)

    # ---- Luong 'dot' attention on the VPU/XLU (avoids M=1 MXU pushes) ----
    enc = enc_ref[...]                                      # (B, S, H)
    scores = jnp.sum(h_new[:, None, :] * enc, axis=2)       # (B, S)
    m = jnp.max(scores, axis=1, keepdims=True)
    e = jnp.exp(scores - m)
    attn = e * pl.reciprocal(jnp.sum(e, axis=1, keepdims=True), approx=True)
    context = jnp.sum(attn[:, :, None] * enc, axis=1)       # (B, H)

    # ---- concat Linear + tanh: tanh([rnn_out ; context] @ Wc^T + bc) ----
    c = jnp.tanh(jnp.dot(h_new, wc_ref[0], preferred_element_type=f32)
                 + jnp.dot(context, wc_ref[1], preferred_element_type=f32)
                 + bc_ref[...])                             # (B, H)

    # ---- output Linear + softmax over lane-dense padded logits (exact norm) ----
    logits = jnp.dot(c, wo_ref[...], preferred_element_type=f32) + bo_ref[...]
    m2 = jnp.max(logits, axis=1, keepdims=True)
    e2 = jnp.exp(logits - m2)                               # padded lanes -> exactly 0
    out_ref[0] = e2 / jnp.sum(e2, axis=1, keepdims=True)    # exact reciprocal (review)

    # carry hidden in scratch; resident output block holds the final hidden
    h_scr[...] = h_new
    hout_ref[...] = h_new


def luong_decoder_decode(packed, tokens, last_hidden, encoder_outputs):
    """Run T decoder steps in ONE pallas_call (weights stay VMEM-resident).

    tokens:          (T, B) int32, tokens[t] is the step-t input_step row
    last_hidden:     (1, B, H)
    encoder_outputs: (S, B, H)   (torch time-major)
    returns (outputs (T, B, OUTPUT) softmax probs, hidden (1, B, H))
    """
    T, B = tokens.shape
    S = encoder_outputs.shape[0]
    enc = jnp.transpose(encoder_outputs, (1, 0, 2)).astype(jnp.float32)  # once, not per step
    h0 = last_hidden[0].astype(jnp.float32)

    const2 = lambda t, ids: (0, 0)
    const3 = lambda t, ids: (0, 0, 0)

    grid_spec = pltpu.PrefetchScalarGridSpec(
        num_scalar_prefetch=1,                   # token ids -> SMEM
        grid=(T,),
        in_specs=[
            pl.BlockSpec((VOCAB, HIDDEN), const2),          # embedding table
            pl.BlockSpec((B, S, HIDDEN), const3),           # encoder outputs
            pl.BlockSpec((B, HIDDEN), const2),              # initial hidden
            pl.BlockSpec((HIDDEN, GATE_PAD), const2),       # fused W_ih^T (r|z|n, padded)
            pl.BlockSpec((HIDDEN, GATE_PAD), const2),       # fused W_hh^T
            pl.BlockSpec((2, GATE_PAD), const2),            # [b_ih ; b_hh]
            pl.BlockSpec((2, HIDDEN, HIDDEN), const3),      # concat W^T halves
            pl.BlockSpec((1, HIDDEN), const2),              # concat bias
            pl.BlockSpec((HIDDEN, OUT_PAD), const2),        # out W^T (lane-padded)
            pl.BlockSpec((1, OUT_PAD), const2),             # out bias (NEG_BIG padded)
        ],
        out_specs=[
            pl.BlockSpec((1, B, OUT_PAD), lambda t, ids: (t, 0, 0)),   # per-step probs
            pl.BlockSpec((B, HIDDEN), const2),                         # final hidden
        ],
        scratch_shapes=[pltpu.VMEM((B, HIDDEN), jnp.float32)],         # carried hidden
    )

    out_pad, h_final = pl.pallas_call(
        decode_kernel,
        out_shape=(jax.ShapeDtypeStruct((T, B, OUT_PAD), jnp.float32),
                   jax.ShapeDtypeStruct((B, HIDDEN), jnp.float32)),
        grid_spec=grid_spec,
        compiler_params=pltpu.CompilerParams(
            dimension_semantics=("arbitrary",)),  # h_t -> h_{t+1} dependence
    )(tokens.astype(jnp.int32), packed["embedding"], enc, h0,
      packed["wih_pad"], packed["whh_pad"], packed["gate_bias"],
      packed["wc"], packed["bc"], packed["wo_pad"], packed["bo_pad"])

    # one slice for the whole decode (padded lanes carry exactly-zero probability)
    return out_pad[:, :, :OUTPUT], h_final[None]


def luong_decoder_step(packed, input_step, last_hidden, encoder_outputs):
    """Exact module.forward signature: input_step (1, B) -> ((B, OUTPUT), (1, B, H))."""
    outs, hidden = luong_decoder_decode(packed, input_step, last_hidden, encoder_outputs)
    return outs[0], hidden


def luong_decoder_ref(params, input_step, last_hidden, encoder_outputs):
    """Pure-JAX reference of the torch forward (single step), for validation."""
    H = HIDDEN
    x = params["embedding"][input_step[0]]                  # (B, H)
    h = last_hidden[0]
    gi = x @ params["wih_t"] + params["bih"]
    gh = h @ params["whh_t"] + params["bhh"]
    r = jax.nn.sigmoid(gi[:, :H] + gh[:, :H])
    z = jax.nn.sigmoid(gi[:, H:2 * H] + gh[:, H:2 * H])
    n = jnp.tanh(gi[:, 2 * H:] + r * gh[:, 2 * H:])
    h_new = (1.0 - z) * n + z * h                           # (B, H)

    scores = jnp.sum(h_new[None, :, :] * encoder_outputs, axis=2)   # (S, B)
    attn = jax.nn.softmax(scores.T, axis=1)                         # (B, S)
    context = jnp.einsum("bs,bsh->bh", attn,
                         jnp.transpose(encoder_outputs, (1, 0, 2)))
    concat_in = jnp.concatenate([h_new, context], axis=1)
    concat_out = jnp.tanh(concat_in @ params["wct"] + params["bc"])
    logits = concat_out @ params["wot"] + params["bo"]
    return jax.nn.softmax(logits, axis=1), h_new[None]


def make_params(key):
    ks = jax.random.split(key, 9)
    s = 1.0 / jnp.sqrt(HIDDEN)
    u = lambda k, shape: jax.random.uniform(k, shape, jnp.float32, -s, s)
    return {
        "embedding": jax.random.normal(ks[0], (VOCAB, HIDDEN), jnp.float32) * 0.1,
        "wih_t": u(ks[1], (HIDDEN, 3 * HIDDEN)),   # W_ih^T (gate order r, z, n)
        "whh_t": u(ks[2], (HIDDEN, 3 * HIDDEN)),   # W_hh^T
        "bih": u(ks[3], (1, 3 * HIDDEN)),
        "bhh": u(ks[4], (1, 3 * HIDDEN)),
        "wct": u(ks[5], (2 * HIDDEN, HIDDEN)),     # concat Linear weight^T
        "bc": u(ks[6], (1, HIDDEN)),
        "wot": u(ks[7], (HIDDEN, OUTPUT)),         # out Linear weight^T
        "bo": u(ks[8], (1, OUTPUT)),
    }


def pack_params(params):
    """One-time packing of the torch-layout tensors into lane-dense kernel slabs."""
    H = HIDDEN
    wih_pad = jnp.zeros((H, GATE_PAD), jnp.float32).at[:, :3 * H].set(params["wih_t"])
    whh_pad = jnp.zeros((H, GATE_PAD), jnp.float32).at[:, :3 * H].set(params["whh_t"])
    gate_bias = (jnp.zeros((2, GATE_PAD), jnp.float32)
                 .at[0, :3 * H].set(params["bih"][0])
                 .at[1, :3 * H].set(params["bhh"][0]))
    wc = jnp.stack([params["wct"][:H, :], params["wct"][H:, :]]).astype(jnp.float32)
    wo_pad = jnp.zeros((H, OUT_PAD), jnp.float32).at[:, :OUTPUT].set(params["wot"])
    bo_pad = jnp.full((1, OUT_PAD), NEG_BIG, jnp.float32).at[:, :OUTPUT].set(params["bo"])
    return {
        "embedding": params["embedding"].astype(jnp.float32),
        "wih_pad": wih_pad,
        "whh_pad": whh_pad,
        "gate_bias": gate_bias,
        "wc": wc,
        "bc": params["bc"].astype(jnp.float32),
        "wo_pad": wo_pad,
        "bo_pad": bo_pad,
    }


if __name__ == "__main__":
    key = jax.random.PRNGKey(0)
    kp, k1, k2, k3 = jax.random.split(key, 4)

    params = make_params(kp)
    packed = pack_params(params)
    tokens = jax.random.randint(k1, (STEPS, BATCH), 0, VOCAB, dtype=jnp.int32)
    last_hidden = jax.random.normal(k2, (N_LAYERS, BATCH, HIDDEN), jnp.float32)
    encoder_outputs = jax.random.normal(k3, (SEQ, BATCH, HIDDEN), jnp.float32)

    # ---- multi-step decode: T steps in one pallas_call ----
    outs, hidden = jax.jit(luong_decoder_decode)(packed, tokens,
                                                 last_hidden, encoder_outputs)
    outs = jax.block_until_ready(outs)
    hidden = jax.block_until_ready(hidden)

    # pure-JAX reference: apply the torch-equivalent single step T times
    h_ref = last_hidden
    outs_ref = []
    for t in range(STEPS):
        o_ref, h_ref = luong_decoder_ref(params, tokens[t:t + 1], h_ref,
                                         encoder_outputs)
        outs_ref.append(o_ref)
    outs_ref = jnp.stack(outs_ref)

    assert outs.shape == (STEPS, BATCH, OUTPUT)
    assert hidden.shape == (N_LAYERS, BATCH, HIDDEN)
    assert jnp.allclose(outs, outs_ref, atol=2e-3, rtol=2e-3)
    assert jnp.allclose(hidden, h_ref, atol=2e-3, rtol=2e-3)
    assert jnp.allclose(jnp.sum(outs, axis=-1), 1.0, atol=1e-4)   # exact normalization

    # ---- single-step path (exact module.forward signature, T = 1) ----
    out1, hid1 = jax.jit(luong_decoder_step)(packed, tokens[0:1],
                                             last_hidden, encoder_outputs)
    out1 = jax.block_until_ready(out1)
    hid1 = jax.block_until_ready(hid1)
    assert out1.shape == (BATCH, OUTPUT) and hid1.shape == (N_LAYERS, BATCH, HIDDEN)
    assert jnp.allclose(out1, outs_ref[0], atol=2e-3, rtol=2e-3)
    assert jnp.allclose(jnp.sum(out1, axis=-1), 1.0, atol=1e-4)

    print("KERNEL_OK")
</pallas_src>

<mosaic_0001>
module attributes {stable_mosaic.version = 11 : i64} {
  func.func @decode_kernel(%arg0: i32, %arg1: memref<6x2xi32, #tpu.memory_space<smem>>, %arg2: memref<50x32xf32, #tpu.memory_space<vmem>>, %arg3: memref<2x8x32xf32, #tpu.memory_space<vmem>>, %arg4: memref<2x32xf32, #tpu.memory_space<vmem>>, %arg5: memref<32x128xf32, #tpu.memory_space<vmem>>, %arg6: memref<32x128xf32, #tpu.memory_space<vmem>>, %arg7: memref<2x128xf32, #tpu.memory_space<vmem>>, %arg8: memref<2x32x32xf32, #tpu.memory_space<vmem>>, %arg9: memref<1x32xf32, #tpu.memory_space<vmem>>, %arg10: memref<32x128xf32, #tpu.memory_space<vmem>>, %arg11: memref<1x128xf32, #tpu.memory_space<vmem>>, %arg12: memref<1x2x128xf32, #tpu.memory_space<vmem>>, %arg13: memref<2x32xf32, #tpu.memory_space<vmem>>, %arg14: memref<2x32xf32, #tpu.memory_space<vmem>>) attributes {dimension_semantics = [#tpu.dimension_semantics<arbitrary>], iteration_bounds = array<i64: 6>, scalar_prefetch = 1 : i64, scratch_operands = 1 : i64, tpu.core_type = #tpu.core_type<tc>, window_params = [{pipeline_mode = #tpu.pipeline_mode<synchronous>, transform_indices = @transform_0, window_bounds = array<i64: 50, 32>}, {pipeline_mode = #tpu.pipeline_mode<synchronous>, transform_indices = @transform_1, window_bounds = array<i64: 2, 8, 32>}, {pipeline_mode = #tpu.pipeline_mode<synchronous>, transform_indices = @transform_2, window_bounds = array<i64: 2, 32>}, {pipeline_mode = #tpu.pipeline_mode<synchronous>, transform_indices = @transform_3, window_bounds = array<i64: 32, 128>}, {pipeline_mode = #tpu.pipeline_mode<synchronous>, transform_indices = @transform_4, window_bounds = array<i64: 32, 128>}, {pipeline_mode = #tpu.pipeline_mode<synchronous>, transform_indices = @transform_5, window_bounds = array<i64: 2, 128>}, {pipeline_mode = #tpu.pipeline_mode<synchronous>, transform_indices = @transform_6, window_bounds = array<i64: 2, 32, 32>}, {pipeline_mode = #tpu.pipeline_mode<synchronous>, transform_indices = @transform_7, window_bounds = array<i64: 1, 32>}, {pipeline_mode = #tpu.pipeline_mode<synchronous>, transform_indices = @transform_8, window_bounds = array<i64: 32, 128>}, {pipeline_mode = #tpu.pipeline_mode<synchronous>, transform_indices = @transform_9, window_bounds = array<i64: 1, 128>}, {transform_indices = @transform_10, window_bounds = array<i64: 1, 2, 128>}, {pipeline_mode = #tpu.pipeline_mode<synchronous>, transform_indices = @transform_11, window_bounds = array<i64: 2, 32>}]} {
    %c0_i32 = arith.constant 0 : i32
    %0 = arith.cmpi eq, %arg0, %c0_i32 : i32
    %1 = arith.extui %0 : i1 to i32
    %c0_i32_0 = arith.constant 0 : i32
    %2 = arith.cmpi ne, %1, %c0_i32_0 : i32
    scf.if %2 {
      %c0_48 = arith.constant 0 : index
      %c0_49 = arith.constant 0 : index
      %98 = vector.load %arg4[%c0_48, %c0_49] : memref<2x32xf32, #tpu.memory_space<vmem>>, vector<2x32xf32>
      %c0_50 = arith.constant 0 : index
      %c0_51 = arith.constant 0 : index
      %99 = vector.load %arg14[%c0_50, %c0_51] : memref<2x32xf32, #tpu.memory_space<vmem>>, vector<2x32xf32>
      tpu.vector_store %arg14[%c0_50, %c0_51], %98 {strides = array<i32>} : memref<2x32xf32, #tpu.memory_space<vmem>>, vector<2x32xf32>,
    } else {
    }
    %c0 = arith.constant 0 : index
    %c0_1 = arith.constant 0 : index
    %3 = vector.load %arg14[%c0, %c0_1] : memref<2x32xf32, #tpu.memory_space<vmem>>, vector<2x32xf32>
    %4 = arith.index_cast %arg0 : i32 to index
    %c0_2 = arith.constant 0 : index
    %5 = memref.load %arg1[%4, %c0_2] : memref<6x2xi32, #tpu.memory_space<smem>>
    %6 = arith.index_cast %5 : i32 to index
    %c0_3 = arith.constant 0 : index
    %7 = vector.load %arg2[%6, %c0_3] : memref<50x32xf32, #tpu.memory_space<vmem>>, vector<1x32xf32>
    %8 = arith.index_cast %arg0 : i32 to index
    %c1 = arith.constant 1 : index
    %9 = memref.load %arg1[%8, %c1] : memref<6x2xi32, #tpu.memory_space<smem>>
    %10 = arith.index_cast %9 : i32 to index
    %c0_4 = arith.constant 0 : index
    %11 = vector.load %arg2[%10, %c0_4] : memref<50x32xf32, #tpu.memory_space<vmem>>, vector<1x32xf32>
    %12 = tpu.concatenate %7, %11 in 0 : vector<1x32xf32>, vector<1x32xf32> -> vector<2x32xf32>
    %c0_5 = arith.constant 0 : index
    %c0_6 = arith.constant 0 : index
    %13 = vector.load %arg5[%c0_5, %c0_6] : memref<32x128xf32, #tpu.memory_space<vmem>>, vector<32x128xf32>
    %cst = arith.constant dense<0.000000e+00> : vector<2x128xf32>
    %14 = tpu.matmul %12, %13, %cst {dimension_numbers = #tpu.dot_dimension_numbers<[1], [0], [0], [1], [0, 0, 1, 1], [], []>} : vector<2x32xf32>, vector<32x128xf32>, vector<2x128xf32> -> vector<2x128xf32>
    %c0_7 = arith.constant 0 : index
    %c0_8 = arith.constant 0 : index
    %15 = vector.load %arg7[%c0_7, %c0_8] : memref<2x128xf32, #tpu.memory_space<vmem>>, vector<1x128xf32>
    %16 = vector.broadcast %15 : vector<1x128xf32> to vector<2x128xf32>
    %17 = arith.addf %14, %16 : vector<2x128xf32>
    %c0_9 = arith.constant 0 : index
    %c0_10 = arith.constant 0 : index
    %18 = vector.load %arg6[%c0_9, %c0_10] : memref<32x128xf32, #tpu.memory_space<vmem>>, vector<32x128xf32>
    %cst_11 = arith.constant dense<0.000000e+00> : vector<2x128xf32>
    %19 = tpu.matmul %3, %18, %cst_11 {dimension_numbers = #tpu.dot_dimension_numbers<[1], [0], [0], [1], [0, 0, 1, 1], [], []>} : vector<2x32xf32>, vector<32x128xf32>, vector<2x128xf32> -> vector<2x128xf32>
    %c1_12 = arith.constant 1 : index
    %c0_13 = arith.constant 0 : index
    %20 = vector.load %arg7[%c1_12, %c0_13] : memref<2x128xf32, #tpu.memory_space<vmem>>, vector<1x128xf32>
    %21 = vector.broadcast %20 : vector<1x128xf32> to vector<2x128xf32>
    %22 = arith.addf %19, %21 : vector<2x128xf32>
    %23 = vector.extract_strided_slice %17 {offsets = [0, 0], sizes = [2, 32], strides = [1, 1]} : vector<2x128xf32> to vector<2x32xf32>
    %24 = vector.extract_strided_slice %22 {offsets = [0, 0], sizes = [2, 32], strides = [1, 1]} : vector<2x128xf32> to vector<2x32xf32>
    %25 = arith.addf %23, %24 : vector<2x32xf32>
    %26 = arith.negf %25 : vector<2x32xf32>
    %27 = math.exp %26 : vector<2x32xf32>
    %cst_14 = arith.constant 1.000000e+00 : f32
    %28 = vector.broadcast %cst_14 : f32 to vector<2x32xf32>
    %29 = arith.addf %28, %27 : vector<2x32xf32>
    %30 = arith.divf %28, %29 : vector<2x32xf32>
    %31 = vector.extract_strided_slice %17 {offsets = [0, 32], sizes = [2, 32], strides = [1, 1]} : vector<2x128xf32> to vector<2x32xf32>
    %32 = vector.extract_strided_slice %22 {offsets = [0, 32], sizes = [2, 32], strides = [1, 1]} : vector<2x128xf32> to vector<2x32xf32>
    %33 = arith.addf %31, %32 : vector<2x32xf32>
    %34 = arith.negf %33 : vector<2x32xf32>
    %35 = math.exp %34 : vector<2x32xf32>
    %cst_15 = arith.constant 1.000000e+00 : f32
    %36 = vector.broadcast %cst_15 : f32 to vector<2x32xf32>
    %37 = arith.addf %36, %35 : vector<2x32xf32>
    %38 = arith.divf %36, %37 : vector<2x32xf32>
    %39 = vector.extract_strided_slice %17 {offsets = [0, 64], sizes = [2, 32], strides = [1, 1]} : vector<2x128xf32> to vector<2x32xf32>
    %40 = vector.extract_strided_slice %22 {offsets = [0, 64], sizes = [2, 32], strides = [1, 1]} : vector<2x128xf32> to vector<2x32xf32>
    %41 = arith.mulf %30, %40 : vector<2x32xf32>
    %42 = arith.addf %39, %41 : vector<2x32xf32>
    %43 = math.tanh %42 : vector<2x32xf32>
    %cst_16 = arith.constant 1.000000e+00 : f32
    %44 = vector.broadcast %cst_16 : f32 to vector<2x32xf32>
    %45 = arith.subf %44, %38 : vector<2x32xf32>
    %46 = arith.mulf %45, %43 : vector<2x32xf32>
    %47 = arith.mulf %38, %3 : vector<2x32xf32>
    %48 = arith.addf %46, %47 : vector<2x32xf32>
    %c0_17 = arith.constant 0 : index
    %c0_18 = arith.constant 0 : index
    %c0_19 = arith.constant 0 : index
    %49 = vector.load %arg3[%c0_17, %c0_18, %c0_19] : memref<2x8x32xf32, #tpu.memory_space<vmem>>, vector<2x8x32xf32>
    %50 = vector.shape_cast %48 : vector<2x32xf32> to vector<2x1x32xf32>
    %51 = vector.broadcast %50 : vector<2x1x32xf32> to vector<2x8x32xf32>
    %52 = arith.mulf %51, %49 : vector<2x8x32xf32>
    %cst_20 = arith.constant dense<0.000000e+00> : vector<2x8xf32>
    %53 = vector.multi_reduction <add>, %52, %cst_20 [2] : vector<2x8x32xf32> to vector<2x8xf32>
    %cst_21 = arith.constant dense<0xFF800000> : vector<2xf32>
    %54 = vector.multi_reduction <maximumf>, %53, %cst_21 [1] : vector<2x8xf32> to vector<2xf32>
    %55 = vector.shape_cast %54 : vector<2xf32> to vector<2x1xf32>
    %56 = vector.broadcast %55 : vector<2x1xf32> to vector<2x8xf32>
    %57 = arith.subf %53, %56 : vector<2x8xf32>
    %58 = math.exp %57 : vector<2x8xf32>
    %cst_22 = arith.constant dense<0.000000e+00> : vector<2xf32>
    %59 = vector.multi_reduction <add>, %58, %cst_22 [1] : vector<2x8xf32> to vector<2xf32>
    %60 = vector.shape_cast %59 : vector<2xf32> to vector<2x1xf32>
    %61 = tpu.reciprocal %60 {approx = true} : vector<2x1xf32> -> vector<2x1xf32>
    %62 = vector.broadcast %61 : vector<2x1xf32> to vector<2x8xf32>
    %63 = arith.mulf %58, %62 : vector<2x8xf32>
    %64 = vector.shape_cast %63 : vector<2x8xf32> to vector<2x8x1xf32>
    %65 = vector.broadcast %64 : vector<2x8x1xf32> to vector<2x8x32xf32>
    %66 = arith.mulf %65, %49 : vector<2x8x32xf32>
    %cst_23 = arith.constant dense<0.000000e+00> : vector<2x32xf32>
    %67 = vector.multi_reduction <add>, %66, %cst_23 [1] : vector<2x8x32xf32> to vector<2x32xf32>
    %c0_24 = arith.constant 0 : index
    %c0_25 = arith.constant 0 : index
    %c0_26 = arith.constant 0 : index
    %68 = vector.load %arg8[%c0_24, %c0_25, %c0_26] : memref<2x32x32xf32, #tpu.memory_space<vmem>>, vector<1x32x32xf32>
    %69 = vector.shape_cast %68 : vector<1x32x32xf32> to vector<32x32xf32>
    %cst_27 = arith.constant dense<0.000000e+00> : vector<2x32xf32>
    %70 = tpu.matmul %48, %69, %cst_27 {dimension_numbers = #tpu.dot_dimension_numbers<[1], [0], [0], [1], [0, 0, 1, 1], [], []>} : vector<2x32xf32>, vector<32x32xf32>, vector<2x32xf32> -> vector<2x32xf32>
    %c1_28 = arith.constant 1 : index
    %c0_29 = arith.constant 0 : index
    %c0_30 = arith.constant 0 : index
    %71 = vector.load %arg8[%c1_28, %c0_29, %c0_30] : memref<2x32x32xf32, #tpu.memory_space<vmem>>, vector<1x32x32xf32>
    %72 = vector.shape_cast %71 : vector<1x32x32xf32> to vector<32x32xf32>
    %cst_31 = arith.constant dense<0.000000e+00> : vector<2x32xf32>
    %73 = tpu.matmul %67, %72, %cst_31 {dimension_numbers = #tpu.dot_dimension_numbers<[1], [0], [0], [1], [0, 0, 1, 1], [], []>} : vector<2x32xf32>, vector<32x32xf32>, vector<2x32xf32> -> vector<2x32xf32>
    %74 = arith.addf %70, %73 : vector<2x32xf32>
    %c0_32 = arith.constant 0 : index
    %c0_33 = arith.constant 0 : index
    %75 = vector.load %arg9[%c0_32, %c0_33] : memref<1x32xf32, #tpu.memory_space<vmem>>, vector<1x32xf32>
    %76 = vector.broadcast %75 : vector<1x32xf32> to vector<2x32xf32>
    %77 = arith.addf %74, %76 : vector<2x32xf32>
    %78 = math.tanh %77 : vector<2x32xf32>
    %c0_34 = arith.constant 0 : index
    %c0_35 = arith.constant 0 : index
    %79 = vector.load %arg10[%c0_34, %c0_35] : memref<32x128xf32, #tpu.memory_space<vmem>>, vector<32x128xf32>
    %cst_36 = arith.constant dense<0.000000e+00> : vector<2x128xf32>
    %80 = tpu.matmul %78, %79, %cst_36 {dimension_numbers = #tpu.dot_dimension_numbers<[1], [0], [0], [1], [0, 0, 1, 1], [], []>} : vector<2x32xf32>, vector<32x128xf32>, vector<2x128xf32> -> vector<2x128xf32>
    %c0_37 = arith.constant 0 : index
    %c0_38 = arith.constant 0 : index
    %81 = vector.load %arg11[%c0_37, %c0_38] : memref<1x128xf32, #tpu.memory_space<vmem>>, vector<1x128xf32>
    %82 = vector.broadcast %81 : vector<1x128xf32> to vector<2x128xf32>
    %83 = arith.addf %80, %82 : vector<2x128xf32>
    %cst_39 = arith.constant dense<0xFF800000> : vector<2xf32>
    %84 = vector.multi_reduction <maximumf>, %83, %cst_39 [1] : vector<2x128xf32> to vector<2xf32>
    %85 = vector.shape_cast %84 : vector<2xf32> to vector<2x1xf32>
    %86 = vector.broadcast %85 : vector<2x1xf32> to vector<2x128xf32>
    %87 = arith.subf %83, %86 : vector<2x128xf32>
    %88 = math.exp %87 : vector<2x128xf32>
    %cst_40 = arith.constant dense<0.000000e+00> : vector<2xf32>
    %89 = vector.multi_reduction <add>, %88, %cst_40 [1] : vector<2x128xf32> to vector<2xf32>
    %90 = vector.shape_cast %89 : vector<2xf32> to vector<2x1xf32>
    %91 = vector.broadcast %90 : vector<2x1xf32> to vector<2x128xf32>
    %92 = arith.divf %88, %91 : vector<2x128xf32>
    %c0_41 = arith.constant 0 : index
    %c0_42 = arith.constant 0 : index
    %c0_43 = arith.constant 0 : index
    %93 = vector.load %arg12[%c0_41, %c0_42, %c0_43] : memref<1x2x128xf32, #tpu.memory_space<vmem>>, vector<1x2x128xf32>
    %94 = vector.shape_cast %93 : vector<1x2x128xf32> to vector<2x128xf32>
    %95 = vector.shape_cast %92 : vector<2x128xf32> to vector<1x2x128xf32>
    tpu.vector_store %arg12[%c0_41, %c0_42, %c0_43], %95 {strides = array<i32>} : memref<1x2x128xf32, #tpu.memory_space<vmem>>, vector<1x2x128xf32>,
    %c0_44 = arith.constant 0 : index
    %c0_45 = arith.constant 0 : index
    %96 = vector.load %arg14[%c0_44, %c0_45] : memref<2x32xf32, #tpu.memory_space<vmem>>, vector<2x32xf32>
    tpu.vector_store %arg14[%c0_44, %c0_45], %48 {strides = array<i32>} : memref<2x32xf32, #tpu.memory_space<vmem>>, vector<2x32xf32>,
    %c0_46 = arith.constant 0 : index
    %c0_47 = arith.constant 0 : index
    %97 = vector.load %arg13[%c0_46, %c0_47] : memref<2x32xf32, #tpu.memory_space<vmem>>, vector<2x32xf32>
    tpu.vector_store %arg13[%c0_46, %c0_47], %48 {strides = array<i32>} : memref<2x32xf32, #tpu.memory_space<vmem>>, vector<2x32xf32>,
    return
  }
  func.func @transform_0(%arg0: i32, %arg1: memref<6x2xi32, #tpu.memory_space<smem>>) -> (i32, i32) {
    %c0_i32 = arith.constant 0 : i32
    %c0_i32_0 = arith.constant 0 : i32
    %c0_i32_1 = arith.constant 0 : i32
    return %c0_i32, %c0_i32_0 : i32, i32
  }
  func.func @transform_1(%arg0: i32, %arg1: memref<6x2xi32, #tpu.memory_space<smem>>) -> (i32, i32, i32) {
    %c0_i32 = arith.constant 0 : i32
    %c0_i32_0 = arith.constant 0 : i32
    %c0_i32_1 = arith.constant 0 : i32
    %c0_i32_2 = arith.constant 0 : i32
    return %c0_i32, %c0_i32_0, %c0_i32_1 : i32, i32, i32
  }
  func.func @transform_2(%arg0: i32, %arg1: memref<6x2xi32, #tpu.memory_space<smem>>) -> (i32, i32) {
    %c0_i32 = arith.constant 0 : i32
    %c0_i32_0 = arith.constant 0 : i32
    %c0_i32_1 = arith.constant 0 : i32
    return %c0_i32, %c0_i32_0 : i32, i32
  }
  func.func @transform_3(%arg0: i32, %arg1: memref<6x2xi32, #tpu.memory_space<smem>>) -> (i32, i32) {
    %c0_i32 = arith.constant 0 : i32
    %c0_i32_0 = arith.constant 0 : i32
    %c0_i32_1 = arith.constant 0 : i32
    return %c0_i32, %c0_i32_0 : i32, i32
  }
  func.func @transform_4(%arg0: i32, %arg1: memref<6x2xi32, #tpu.memory_space<smem>>) -> (i32, i32) {
    %c0_i32 = arith.constant 0 : i32
    %c0_i32_0 = arith.constant 0 : i32
    %c0_i32_1 = arith.constant 0 : i32
    return %c0_i32, %c0_i32_0 : i32, i32
  }
  func.func @transform_5(%arg0: i32, %arg1: memref<6x2xi32, #tpu.memory_space<smem>>) -> (i32, i32) {
    %c0_i32 = arith.constant 0 : i32
    %c0_i32_0 = arith.constant 0 : i32
    %c0_i32_1 = arith.constant 0 : i32
    return %c0_i32, %c0_i32_0 : i32, i32
  }
  func.func @transform_6(%arg0: i32, %arg1: memref<6x2xi32, #tpu.memory_space<smem>>) -> (i32, i32, i32) {
    %c0_i32 = arith.constant 0 : i32
    %c0_i32_0 = arith.constant 0 : i32
    %c0_i32_1 = arith.constant 0 : i32
    %c0_i32_2 = arith.constant 0 : i32
    return %c0_i32, %c0_i32_0, %c0_i32_1 : i32, i32, i32
  }
  func.func @transform_7(%arg0: i32, %arg1: memref<6x2xi32, #tpu.memory_space<smem>>) -> (i32, i32) {
    %c0_i32 = arith.constant 0 : i32
    %c0_i32_0 = arith.constant 0 : i32
    %c0_i32_1 = arith.constant 0 : i32
    return %c0_i32, %c0_i32_0 : i32, i32
  }
  func.func @transform_8(%arg0: i32, %arg1: memref<6x2xi32, #tpu.memory_space<smem>>) -> (i32, i32) {
    %c0_i32 = arith.constant 0 : i32
    %c0_i32_0 = arith.constant 0 : i32
    %c0_i32_1 = arith.constant 0 : i32
    return %c0_i32, %c0_i32_0 : i32, i32
  }
  func.func @transform_9(%arg0: i32, %arg1: memref<6x2xi32, #tpu.memory_space<smem>>) -> (i32, i32) {
    %c0_i32 = arith.constant 0 : i32
    %c0_i32_0 = arith.constant 0 : i32
    %c0_i32_1 = arith.constant 0 : i32
    return %c0_i32, %c0_i32_0 : i32, i32
  }
  func.func @transform_10(%arg0: i32, %arg1: memref<6x2xi32, #tpu.memory_space<smem>>) -> (i32, i32, i32) {
    %c0_i32 = arith.constant 0 : i32
    %c0_i32_0 = arith.constant 0 : i32
    %c0_i32_1 = arith.constant 0 : i32
    return %arg0, %c0_i32, %c0_i32_0 : i32, i32, i32
  }
  func.func @transform_11(%arg0: i32, %arg1: memref<6x2xi32, #tpu.memory_space<smem>>) -> (i32, i32) {
    %c0_i32 = arith.constant 0 : i32
    %c0_i32_0 = arith.constant 0 : i32
    %c0_i32_1 = arith.constant 0 : i32
    return %c0_i32, %c0_i32_0 : i32, i32
  }
}

</mosaic_0001>

<bundles_post_ra>
// kernel: luong_decoder_decode.1
= control target key start
LH: loop header
LB: loop body
LE: loop exit
PB: predicated region body
PF: predicated region fallthrough
CT: control target
= control target key end

     0   :  { %s2057_s0 = inlined_call_operand.vmem [shape: s32[6,2], index: 0, kind: input, shape index: {}]   ;;  %s2058_s1 = inlined_call_operand.vmem [shape: f32[50,32], index: 1, kind: input, shape index: {}]   ;;  %s2059_s2 = inlined_call_operand.vmem [shape: f32[2,8,32], index: 2, kind: input, shape index: {}]   ;;  %s2060_s3 = inlined_call_operand.vmem [shape: f32[2,32], index: 3, kind: input, shape index: {}]   ;;  %s2061_s4 = inlined_call_operand.vmem [shape: f32[32,128], index: 4, kind: input, shape index: {}]   ;;  %s2062_s5 = inlined_call_operand.vmem [shape: f32[32,128], index: 5, kind: input, shape index: {}]   ;;  %s2063_s6 = inlined_call_operand.hbm [shape: f32[2,128], index: 6, kind: input, shape index: {}]   ;;  %s2064_s7 = inlined_call_operand.vmem [shape: f32[2,32,32], index: 7, kind: input, shape index: {}]   ;;  %s2065_s8 = inlined_call_operand.hbm [shape: f32[1,32], index: 8, kind: input, shape index: {}]   ;;  %s2066_s9 = inlined_call_operand.vmem [shape: f32[32,128], index: 9, kind: input, shape index: {}]   ;;  %s2067_s10 = inlined_call_operand.hbm [shape: f32[1,128], index: 10, kind: input, shape index: {}]   ;;  %s2068_s11 = inlined_call_operand.hbm [shape: f32[6,2,128], index: 11, kind: output, shape index: {0}]   ;;  %s2069_s12 = inlined_call_operand.hbm [shape: f32[2,32], index: 12, kind: output, shape index: {1}]  }
   0x1   :  { %s18_s23 = sshll.u32 %s2057_s0, 4  ;;  %s19_s23 = int_to_ptr.vmem [resolvable:$true] %s18_s23 }
   0x2   :  { %s1412_s24 = scalar_lea.vmem %s19_s23, 128  ;;  %p1417_p1 = scmp.lt.s32.totalorder %s19_s23, %s19_s23 }
   0x3   :  { %p1413_p0 = scmp.ne.s32.totalorder %s19_s23, %s1412_s24  ;;  %p1418_p2 = scmp.lt.s32.totalorder %s1412_s24, %s1412_s24 }
   0x5   :  { %p1419_p3 = por %p1418_p2, %p1417_p1 }
   0x7   :  { %p1420_p4 = pnand %p1419_p3, %p1413_p0 }
   0x9   :  { %1423 = shalt.err (!%p1420_p4)  }
   0xa   :  { %s1612_s25 = smov [#allocation4]  }
   0xb   :  { %21 = dma.vmem_to_smem %s19_s23, 128, %s1612_s25, [#allocation3] }
   0xc   :  { %1578 = dma.done.wait [#allocation3], 128 }
   0xd   :  { %1579 = vsyncadd [#allocation3], 4294967168 }
   0xe   :  { %23 = sfence }
   0xf   :  { %24 = vsyncpa [#allocation6], 0 }
  0x10   :  { %25 = vsyncpa [#allocation9], 0 }
  0x11   :  { %26 = vsyncpa [#allocation7], 0 }
  0x12   :  { %28 = vsyncpa [#allocation7 + $0x1], 0 }
  0x13   :  { %29 = vsyncpa [#allocation13], 0  ;;  %s1694_s26 = smov 0   ;;  %s1696_s0 = smov 0  }
  0x14   :  { %s1698_s27 = smov 0   ;;  %s1700_s28 = smov 0  }
  0x15 LB: > { %2079 = sst [smem:[#allocation19_spill]] %s1598_s26  ;;  %s1715_s29 = sadd.s32 4294967295, %s1610_s28   ;;  %s1610_s28 = sphi %s1700_s28, %s2104_s28   ;;  %s1606_s27 = sphi %s1698_s27, %s2106_s27   ;;  %s1602_s0 = sphi %s1696_s0, %s2108_s0   ;;  %s1598_s26 = sphi %s1694_s26, %s2107_s26  }
  0x16   : > { %2080 = sst [smem:[#allocation20_spill]] %s1606_s27  ;;  %s1164_s30 = sadd.s32 4294967294, %s1610_s28  }
  0x17   : > { %s1719_s13 = sadd.s32 1, %s1610_s28   ;;  %s252_s14 = sadd.s32 1, %s1606_s27 }
  0x18   : > { %2081 = sst [smem:[#allocation21_spill]] %s1719_s13  ;;  %s249_s15 = ssub.s32 %s1610_s28, %s1719_s13 }
  0x19   : > { %p262_p5 = scmp.ne.s32.totalorder %s1606_s27, %s1602_s0  ;;  %p250_p6 = scmp.eq.s32.totalorder %s249_s15, 0 }
  0x1a   : > { %p2073_p7 = scmp.eq.s32.totalorder %s1715_s29, 5  ;;  %p268_p8 = scmp.ne.s32.totalorder %s1602_s0, %s1598_s26 }
  0x1b   : > { %p269_p9 = scmp.eq.s32.totalorder %s1164_s30, 5  ;;  %p1165_p12 = scmp.ge.s32.totalorder %s1610_s28, 1 }
  0x1c   : > { %s1730_s16 = scalar_select %p250_p6, %s1606_s27, %s252_s14  }
  0x1d   : > { %p1734_p10 = por %p2073_p7, %p262_p5  ;;  %p1738_p11 = por %p269_p9, %p268_p8 }
  0x1e   : > { %2082 = sst [smem:[#allocation22_spill]] %s1730_s16  ;;  %p297_p13 = scmp.lt.s32.totalorder %s1610_s28, 7 }
  0x1f   : > { %s2083_s17 = scalar_select %p1734_p10, 1, 0 }
  0x20   : > { %s2084_s18 = scalar_select %p1738_p11, 1, 0 }
  0x21   : > { %p2074_p1 = scmp.eq.s32.totalorder %s1715_s29, 0  ;;  %p1746_p2 = pnand %p1165_p12, %p297_p13 }
  0x22   : > { %2085 = sst [smem:[#allocation23_spill]] %s2084_s18  ;;  %s1613_s20 = smov [#allocation8]  }
  0x23   : > { %s2086_s19 = scalar_select %p1746_p2, 1, 0 }
  0x24   : > { %s339_s21 = sshll.u32 %s1613_s20, 4  ;;  %p1324_p3 = pneg %p1746_p2  ;;  %s340_s21 = int_to_ptr.vmem [resolvable:$true] %s339_s21 }
  0x25   : > { %s1614_s22 = smov [#allocation5]   ;;  %s1615_s25 = smov [#allocation10]  }
  0x26   : > { %s325_s23 = sshll.u32 %s1614_s22, 4  ;;  %p1754_p4 = pnand %p2074_p1, %p1324_p3  ;;  %s1758_s23 = int_to_ptr.vmem [resolvable:$true] %s325_s23 }
  0x27   : > { %s353_s30 = sshll.u32 %s1615_s25, 4  ;;  %s1424_s20 = scalar_lea.hbm %s2065_s8, 16  ;;  %s1760_s30 = int_to_ptr.vmem [resolvable:$true] %s353_s30 }
  0x28   : > { %p1425_p5 = scmp.ne.s32.totalorder %s2065_s8, %s1424_s20  ;;  %p1770_p6 = pneg %p1754_p4 }
  0x29   : > { %p1431_p12 = scmp.lt.u32.totalorder %s1424_s20, %s2065_s8 }
  0x2a   : > { %p1427_p8 = pnand %p1770_p6, %p1425_p5 }
  0x2c   : > { %p1428_p9 = pneg %p1427_p8 }
  0x2e   : > { %p1433_p13 = pnand %p1431_p12, %p1428_p9 }
  0x30   : > { %1436 = shalt.err (!%p1433_p13)
}
  0x31   : > { %s1437_s14 = scalar_lea.vmem %s340_s21, 16  ;;  %s1444_s27 = scalar_lea.vmem %s340_s21, 32 }
  0x32   : > { %p1438_p3 = scmp.ne.s32.totalorder %s340_s21, %s1437_s14  ;;  %p1445_p1 = scmp.lt.s32.totalorder %s340_s21, %s340_s21 }
  0x33   : > { %p1446_p11 = scmp.lt.s32.totalorder %s1444_s27, %s1437_s14 }
  0x34   : > { %p1440_p7 = pnand %p1438_p3, %p1770_p6 }
  0x35   : > { %p1447_p10 = por %p1446_p11, %p1445_p1 }
  0x36   : > { %p1441_p0 = pneg %p1440_p7 }
  0x38   : > { %p1448_p2 = pnand %p1447_p10, %p1441_p0 }
  0x3a   : > { %1451 = shalt.err (!%p1448_p2)
}
  0x3b   : > { %1330 = dma.hbm_to_vmem [thread:$0]  (!%p1754_p4), %s2065_s8, 16, %s340_s21, [#allocation9]  }
  0x3c   : > { %s1452_s25 = scalar_lea.hbm %s2063_s6, 32 }
  0x3d   : > { %p1453_p7 = scmp.ne.s32.totalorder %s2063_s6, %s1452_s25  ;;  %p1459_p10 = scmp.lt.u32.totalorder %s1452_s25, %s2063_s6 }
  0x3f   : > { %p1455_p5 = pnand %p1453_p7, %p1770_p6 }
  0x41   : > { %p1456_p11 = pneg %p1455_p5 }
  0x43   : > { %p1461_p0 = pnand %p1459_p10, %p1456_p11 }
  0x45   : > { %1464 = shalt.err (!%p1461_p0)
}
  0x46   : > { %s1465_s21 = scalar_lea.vmem %s1758_s23, 32  ;;  %p1473_p9 = scmp.lt.s32.totalorder %s1758_s23, %s1758_s23 }
  0x47   : > { %p1466_p1 = scmp.ne.s32.totalorder %s1758_s23, %s1465_s21  ;;  %p1474_p12 = scmp.lt.s32.totalorder %s1465_s21, %s1465_s21 }
  0x49   : > { %p1468_p2 = pnand %p1466_p1, %p1770_p6  ;;  %p1475_p13 = por %p1474_p12, %p1473_p9 }
  0x4b   : > { %p1469_p8 = pneg %p1468_p2 }
  0x4d   : > { %p1476_p3 = pnand %p1475_p13, %p1469_p8 }
  0x4f   : > { %1479 = shalt.err (!%p1476_p3)
}
  0x50   : > { %1327 = dma.hbm_to_vmem [thread:$0]  (!%p1754_p4), %s2063_s6, 32, %s1758_s23, [#allocation6]  }
  0x51   : > { %s1480_s13 = scalar_lea.hbm %s2067_s10, 16 }
  0x52   : > { %p1481_p7 = scmp.ne.s32.totalorder %s2067_s10, %s1480_s13  ;;  %p1487_p10 = scmp.lt.u32.totalorder %s1480_s13, %s2067_s10 }
  0x54   : > { %p1483_p5 = pnand %p1481_p7, %p1770_p6 }
  0x56   : > { %p1484_p11 = pneg %p1483_p5 }
  0x58   : > { %p1489_p0 = pnand %p1487_p10, %p1484_p11 }
  0x5a   : > { %1492 = shalt.err (!%p1489_p0)
}
  0x5b   : > { %s1493_s23 = scalar_lea.vmem %s1760_s30, 16  ;;  %s1500_s21 = scalar_lea.vmem %s1760_s30, 32 }
  0x5c   : > { %p1494_p1 = scmp.ne.s32.totalorder %s1760_s30, %s1493_s23  ;;  %p1501_p9 = scmp.lt.s32.totalorder %s1760_s30, %s1760_s30 }
  0x5d   : > { %p1502_p12 = scmp.lt.s32.totalorder %s1500_s21, %s1493_s23 }
  0x5e   : > { %p1496_p2 = pnand %p1494_p1, %p1770_p6 }
  0x5f   : > { %p1503_p13 = por %p1502_p12, %p1501_p9 }
  0x60   : > { %p1497_p8 = pneg %p1496_p2 }
  0x62   : > { %p1504_p3 = pnand %p1503_p13, %p1497_p8 }
  0x64   : > { %1507 = shalt.err (!%p1504_p3)
}
  0x65   : > { %1333 = dma.hbm_to_vmem [thread:$0]  (!%p1754_p4), %s2067_s10, 16, %s1760_s30, [#allocation9]  }
  0x66   : > { %p2089_p7 = scmp.ne.s32.totalorder %s2086_s19, 0 }
  0x67   : > { %p2090_p6 = scmp.eq.s32.totalorder (!%p2089_p7), %s1715_s29, 0 }
  0x68   : > { %366 = sbr.rel (%p2089_p7) target bundleno = 2360 (0x938), region = 60 }
  0x6f   : > { %1581 = dma.done.wait (%p2090_p6), [#allocation6], 32   ;;  %p2091_p5 = pmov %p2090_p6 }
  0x71   : > { %1583 = vsyncadd (%p2091_p5), [#allocation6], 4294967264  ;;  %p2092_p11 = pmov %p2091_p5 }
  0x72   : > { %p2093_p10 = pmov %p2091_p5 }
  0x73   : > { %1585 = dma.done.wait (%p2092_p11), [#allocation9], 32  }
  0x74   : > { %1587 = vsyncadd (%p2093_p10), [#allocation9], 4294967264  ;;  %s404_s24 = sand.u32 1, %s1602_s0   ;;  %p2094_p4 = scmp.ne.s32.totalorder %s1715_s29, 0 }
  0x75   : > { %s1846_s30 = sshll.u32 %s404_s24, 1  ;;  %v413_v0 = vld [vmem:[%s2060_s3] sm:$0x3] (!%p2094_p4)  ;;  %vm414_vm0 = vcmask (!%p2094_p4), 254976  }
  0x76   : > { %s406_s19 = scalar_lea.vmem [#allocation11], %s1846_s30  ;;  %412 = sbr.rel (%p2094_p4) target bundleno = 125 (0x7d), region = 76  ;;  %415 = vst.msk [vmem:[#allocation2] sm:$0x3] (!%p2094_p4), %vm414_vm0, %v413_v0 }
  0x7d PF: > { %v513_v1 = vld [vmem:[%s2062_s5] sm:$0xff]  ;;  %v514_v2 = vld [vmem:[%s2062_s5 + $0x8] sm:$0xff]  ;;  %v1616_v4 = vmov 0.0|0.0   ;;  %v515_v7 = vld [vmem:[%s2062_s5 + $0x10] sm:$0xff]  ;;  %s1175_s15 = sshll.u32 %s1715_s29, 7  ;;  %vm1617_vm1 = vmmov 0   ;;  %v630_v42 = vlaneseq }
  0x7e   : > { %v430_v3 = vld [vmem:[%s2061_s4] sm:$0xff]  ;;  %1282 = vmatprep.subr.bf16.mxu1 %v1616_v4  ;;  %v1283_v5 = vpack.c.bf16 %v514_v2, %v513_v1  ;;  %1276 = vmatprep.subr.bf16.mxu0 %v1616_v4  ;;  %v431_v6 = vld [vmem:[%s2061_s4 + $0x8] sm:$0xff]  ;;  %v516_v8 = vld [vmem:[%s2062_s5 + $0x18] sm:$0xff]  ;;  %v1618_v10 = vmov 0.0   ;;  %s418_s27 = sld [smem:[#allocation4 + %s1175_s15]]  ;;  %s421_s23 = sadd.s32 1, %s1175_s15 }
  0x7f   : > { %v1277_v9 = vpack.c.bf16 %v431_v6, %v430_v3  ;;  %1240 = vmatprep.mubr.msk.f32.mxu1 %vm1617_vm1, %v1618_v10  ;;  %v432_v11 = vld [vmem:[%s2061_s4 + $0x10] sm:$0xff]  ;;  %v433_v12 = vld [vmem:[%s2061_s4 + $0x18] sm:$0xff]  ;;  %1229 = vmatprep.mubr.msk.f32.mxu0 %vm1617_vm1, %v1618_v10  ;;  %v1286_v13 = vpack.c.bf16 %v516_v8, %v515_v7  ;;  %s422_s21 = sld [smem:[#allocation4 + %s421_s23]]  ;;  %v416_v15 = vld [vmem:[#allocation2] sm:$0x3]  ;;  %vm439_vm2 = vcmask 261120  }
  0x80   : > { %1284 = vmatpush3.bf16.msra.mxu1 %v1283_v5  ;;  %v1280_v14 = vpack.c.bf16 %v433_v12, %v432_v11  ;;  %vm428_vm3 = vcmask 1040384   ;;  %v1178_v20 = vld [vmem:[#allocation5 + $0x1] ss:$0 sm:$0xff]  ;;  %s1619_s20 = smov 64   ;;  %v1176_v26 = vld [vmem:[#allocation5] ss:$0 sm:$0xff] }
  0x81   : > { %1278 = vmatpush3.bf16.msra.mxu0 %v1277_v9  ;;  %1285 = vmatprep.subr.bf16.mxu1 %v1616_v4  ;;  %v1904_v35 = vld [vmem:[%s2059_s2] sm:$0xff]  ;;  %s1621_s23 = smov 96   ;;  %v1911_v39 = vld [vmem:[%s2059_s2 + $0x8] sm:$0xff]  ;;  %v1622_v40 = vmov 1966171168   ;;  %v1914_v45 = vshrl.u32 %v630_v42, 7 }
  0x82   : > { %1279 = vmatprep.subr.bf16.mxu0 %v1616_v4  ;;  %v628_v41 = vunpack.c.l.s4 %v1622_v40  ;;  %v686_v3 = vand.u32 127, %v630_v42  ;;  %vm695_vm4 = vcmask 1041409   ;;  %vm698_vm5 = vcmask 58368   ;;  %v783_v42 = vld [vmem:[%s2064_s7 + $0x18] sm:$0xff]  ;;  %p2095_p1 = scmp.eq.s32.totalorder %s1715_s29, 5 }
  0x83   : > { %v651_v53 = vsub.s32 0, %v1914_v45  ;;  %vm1045_vm6 = vcmask 254976   ;;  %vm1031_vm7 = vcmask 1041408  }
  0x84   : > { %1287 = vmatpush3.bf16.msra.mxu1 %v1286_v13  ;;  %s419_s22 = scalar_lea.vmem %s2058_s1, %s418_s27  ;;  %s1620_s27 = smov 32   ;;  %v629_v44 = vunpack.c.0.s8 %v628_v41  ;;  %v689_v5 = vsub.s32 %v686_v3, %v1914_v45  ;;  %v1623_v13 = vmov 0   ;;  %v782_v41 = vld [vmem:[%s2064_s7 + $0x10] sm:$0xff] }
  0x85   : > { %1281 = vmatpush3.bf16.msra.mxu0 %v1280_v14  ;;  %1294 = vmatprep.subr.bf16.mxu1 %v1616_v4  ;;  %s423_s13 = scalar_lea.vmem %s2058_s1, %s422_s21  ;;  %v420_v16 = vld [vmem:[%s419_s22] sm:$0x1]  ;;  %v709_v14 = vsub.s32 1, %v1914_v45  ;;  %s1624_s22 = smov [#allocation12]  }
  0x86   : > { %1288 = vmatprep.subr.bf16.mxu0 %v1616_v4  ;;  %v424_v17 = vld [vmem:[%s423_s13] sm:$0x1]  ;;  %v632_v49 = vsub.s32 %v629_v44, %v1914_v45  ;;  %1393 = vset.pattern.permute.xlu1 %v1623_v13  ;;  %v1182_v45 = vld [vmem:[%s2064_s7 + $0x28] sm:$0xff]  ;;  %s1073_s16 = sshll.u32 %s1624_s22, 4  ;;  %s1074_s16 = int_to_ptr.vmem [resolvable:$true] %s1073_s16 }
  0x87   : > { %1241 = vmatmul.mubr.msk.f32.vlgmr.msra.gmra.mrb[0].mxu1 %vm439_vm2, %v416_v15  ;;  %v426_v18 = vrot.slane %v424_v17, 7  ;;  %1392 = vset.pattern.permute.xlu0 %v1623_v13  ;;  %v1181_v44 = vld [vmem:[%s2064_s7 + $0x20] sm:$0xff]  ;;  %s1508_s15 = scalar_lea.vmem %s1074_s16, 32  ;;  %p1515_p9 = scmp.lt.s32.totalorder %s1074_s16, %s1074_s16 }
  0x88   : > { %1262 = vmatprep.mubr.msk.f32.mxu1 %vm1617_vm1, %v1618_v10  ;;  %p1509_p0 = scmp.ne.s32.totalorder %s1074_s16, %s1508_s15  ;;  %p1516_p12 = scmp.lt.s32.totalorder %s1508_s15, %s1508_s15 }
  0x89   : > { %v429_v19 = vsel %vm428_vm3, %v420_v16, %v426_v18 }
  0x8a   : > { %1230 = vmatmul.mubr.msk.f32.vlgmr.msra.gmra.mrb[0].mxu0 %vm439_vm2, %v429_v19  ;;  %p1510_p2 = pnand %p1509_p0, %p2095_p1  ;;  %p1517_p13 = por %p1516_p12, %p1515_p9 }
  0x8b   : > { %1251 = vmatprep.mubr.msk.f32.mxu0 %vm1617_vm1, %v1618_v10 }
  0x8c   : > { %p1511_p8 = pneg %p1510_p2 }
  0x8e   : > { %p1518_p3 = pnand %p1517_p13, %p1511_p8 }
 0x15a   : > { %v591_v21 = vpop.f32.mrb[0].mxu1 }
 0x15b   : > { %v592_v22 = vadd.f32 %v1178_v20, %v591_v21  ;;  %v1242_v23 = vpop.f32.mrb[1].mxu1 }
 0x15d   : > { %603 = vrot.lane.b32.xlu0 %v592_v22, %s1619_s20  ;;  %v509_v24 = vpop.f32.mrb[0].mxu0 }
 0x15e   : > { %v1231_v25 = vpop.f32.mrb[1].mxu0  ;;  %v510_v27 = vadd.f32 %v1176_v26, %v509_v24 }
 0x160   : > { %v595_v28 = vadd.f32 %v592_v22, %v510_v27 }
 0x162   : > { %v1180_v29 = vmul.f32 -1.442695, %v595_v28 }
 0x164   : > { %1394 = vpow2.f32 %v1180_v29 }
 0x16e   : > { %v1395_v30 = vpop.eup %1394 }
 0x16f   : > { %v599_v31 = vadd.f32 1.0, %v1395_v30 }
 0x171   : > { %1396 = vrcp.f32 %v599_v31 }
 0x17b   : > { %v1397_v32 = vpop.eup %1396 }
 0x17c   : > { %v613_v46 = vsub.f32 1.0, %v1397_v32 }
 0x1cf   : > { %v604_v33 = vpop.permute.xlu0 %603 }
 0x1d0   : > { %v606_v34 = vmul.f32 %v1397_v32, %v604_v33 }
 0x1d2   : > { %608 = vrot.lane.b32.xlu0 %v606_v34, %s1619_s20 }
 0x1d6   : > { %661 = vrot.lane.b32.xlu0 %v1904_v35, %s1620_s27 }
 0x244   : > { %v609_v36 = vpop.permute.xlu0 %608 }
 0x245   : > { %v611_v37 = vadd.f32 %v609_v36, %v510_v27  ;;  %v780_v36 = vld [vmem:[%s2064_s7] sm:$0xff] }
 0x247   : > { %1398 = vtanh.f32 %v611_v37  ;;  %v781_v37 = vld [vmem:[%s2064_s7 + $0x8] sm:$0xff] }
 0x248   : > { %v662_v56 = vpop.permute.xlu0 %661 }
 0x251   : > { %v1399_v38 = vpop.eup %1398 }
 0x252   : > { %615 = vrot.lane.b32.xlu1 %v1399_v38, %s1621_s23  ;;  %v1295_v38 = vpack.c.bf16 %v781_v37, %v780_v36 }
 0x254   : > { %1296 = vmatpush3.bf16.msra.mxu1 %v1295_v38 }
 0x255   : > { %1297 = vmatprep.subr.bf16.mxu1 %v1616_v4 }
 0x256   : > { %619 = vrot.lane.b32.xlu1 %v416_v15, %s1620_s27 }
 0x25a   : > { %663 = vrot.lane.b32.xlu1 %v1911_v39, %s1620_s27 }
 0x2c4   : > { %v616_v43 = vpop.permute.xlu1 %615 }
 0x2c5   : > { %v618_v48 = vmul.f32 %v616_v43, %v613_v46  ;;  %v1298_v43 = vpack.c.bf16 %v783_v42, %v782_v41  ;;  %v1289_v46 = vpack.c.bf16 %v1182_v45, %v1181_v44 }
 0x2c7   : > { %1299 = vmatpush3.bf16.msra.mxu1 %v1298_v43  ;;  %1290 = vmatpush3.bf16.msra.mxu0 %v1289_v46 }
 0x2c8   : > { %v620_v47 = vpop.permute.xlu1 %619  ;;  %1291 = vmatprep.subr.bf16.mxu0 %v1616_v4 }
 0x2c9   : > { %v622_v50 = vmul.f32 %v1397_v32, %v620_v47  ;;  %v1183_v47 = vld [vmem:[%s2064_s7 + $0x30] sm:$0xff] }
 0x2cb   : > { %v1917_v51 = vadd.f32 %v622_v50, %v618_v48  ;;  %v1184_v48 = vld [vmem:[%s2064_s7 + $0x38] sm:$0xff] }
 0x2cc   : > { %v664_v59 = vpop.permute.xlu1 %663 }
 0x2cd   : > { %v633_v52 = vrot.slane %v1917_v51, %v632_v49 }
 0x2cf   : > { %v641_v54 = vrot.slane %v633_v52, %v632_v49  ;;  %v634_v55 = vcombine.high %v633_v52, %v633_v52 }
 0x2d1   : > { %v652_v57 = vrot.slane %v641_v54, %v651_v53  ;;  %v648_v58 = vrot.slane %v634_v55, %v632_v49  ;;  %v1292_v49 = vpack.c.bf16 %v1184_v48, %v1183_v47 }
 0x2d3   : > { %v667_v60 = vmul.f32 %v662_v56, %v652_v57  ;;  %v656_v61 = vrot.slane %v648_v58, %v651_v53  ;;  %1293 = vmatpush3.bf16.msra.mxu0 %v1292_v49 }
 0x2d4   : > { %1300 = vmatprep.subr.bf16.mxu0 %v1616_v4 }
 0x2d5   : > { %v668_v62 = vmul.f32 %v664_v59, %v656_v61  ;;  %671 = vrot.lane.b32.xlu0 %v667_v60, %s1621_s23 }
 0x2d7   : > { %673 = vrot.lane.b32.xlu1 %v668_v62, %s1621_s23 }
 0x347   : > { %v672_v63 = vpop.permute.xlu0 %671 }
 0x348   : > { %v677_v0 = vsel %vm439_vm2, %v672_v63, 0.0 }
 0x349   : > { %v674_v1 = vpop.permute.xlu1 %673  ;;  %678 = vadd.xlane.f32.xlu0 %v677_v0 }
 0x34a   : > { %v680_v2 = vsel %vm439_vm2, %v674_v1, 0.0 }
 0x34b   : > { %681 = vadd.xlane.f32.xlu1 %v680_v2 }
 0x3d6   : > { %v679_v6 = vpop.xlane.xlu0 %678 }
 0x3d7   : > { %v690_v8 = vrot.slane %v679_v6, %v689_v5 }
 0x3d8   : > { %v682_v7 = vpop.xlane.xlu1 %681 }
 0x3d9   : > { %v694_v9 = vrot.slane %v682_v7, %v689_v5 }
 0x3db   : > { %v696_v11 = vsel %vm695_vm4, %v694_v9, %v690_v8  ;;  %v950_v9 = vld [vmem:[%s2066_s9 + $0x18] sm:$0xff] }
 0x3dc   : > { %v699_v12 = vsel %vm698_vm5, %v696_v11, -inf }
 0x3dd   : > { %700 = vmax.xlane.f32.xlu0 %v699_v12 }
 0x46a   : > { %v701_v15 = vpop.xlane.xlu0 %700 }
 0x46b   : > { %v706_v16 = vrot.slane %v701_v15, %v651_v53  ;;  %v710_v17 = vrot.slane %v701_v15, %v709_v14 }
 0x46d   : > { %v713_v18 = vsub.f32 %v679_v6, %v706_v16  ;;  %v714_v19 = vsub.f32 %v682_v7, %v710_v17  ;;  %v948_v6 = vld [vmem:[%s2066_s9 + $0x8] sm:$0xff]  ;;  %v949_v7 = vld [vmem:[%s2066_s9 + $0x10] sm:$0xff] }
 0x46e   : > { %v1304_v11 = vpack.c.bf16 %v950_v9, %v949_v7 }
 0x46f   : > { %v715_v20 = vmul.f32 1.442695, %v713_v18  ;;  %v717_v21 = vmul.f32 1.442695, %v714_v19  ;;  %v1188_v19 = vld [vmem:[#allocation10] ss:$0 sm:$0xff] }
 0x471   : > { %1400 = vpow2.f32 %v715_v20 }
 0x472   : > { %1402 = vpow2.f32 %v717_v21 }
 0x47b   : > { %v1401_v22 = vpop.eup %1400 }
 0x47c   : > { %v1403_v23 = vpop.eup %1402  ;;  %722 = vperm.xlu0 %1392, %v1401_v22  }
 0x47d   : > { %725 = vperm.xlu1 %1393, %v1403_v23  }
 0x4fb   : > { %v723_v24 = vpop.permute.xlu0 %722 }
 0x4fc   : > { %v726_v25 = vpop.permute.xlu1 %725  ;;  %v730_v26 = vrot.slane %v723_v24, %v689_v5 }
 0x4fd   : > { %v734_v27 = vrot.slane %v726_v25, %v689_v5  ;;  %v947_v5 = vld [vmem:[%s2066_s9] sm:$0xff] }
 0x4fe   : > { %v1301_v8 = vpack.c.bf16 %v948_v6, %v947_v5 }
 0x4ff   : > { %v735_v28 = vsel %vm695_vm4, %v734_v27, %v730_v26 }
 0x500   : > { %v737_v29 = vsel %vm698_vm5, %v735_v28, 0.0 }
 0x501   : > { %738 = vadd.xlane.f32.xlu1 %v737_v29 }
 0x58e   : > { %v739_v30 = vpop.xlane.xlu1 %738 }
 0x58f   : > { %1404 = vrcp.f32 %v739_v30 }
 0x599   : > { %v1405_v31 = vpop.eup %1404 }
 0x59a   : > { %v745_v32 = vrot.slane %v1405_v31, %v651_v53  ;;  %v749_v34 = vrot.slane %v1405_v31, %v709_v14  ;;  %v1187_v14 = vld [vmem:[#allocation8] ss:$0 sm:$0xff] }
 0x59c   : > { %v752_v33 = vmul.f32 %v1401_v22, %v745_v32  ;;  %v753_v40 = vmul.f32 %v1403_v23, %v749_v34 }
 0x59e   : > { %756 = vperm.xlu0 %1392, %v752_v33  }
 0x5a2   : > { %761 = vperm.xlu0 %1392, %v753_v40  }
 0x5a6   : > { %864 = vrot.lane.b32.xlu0 %v1917_v51, %s1621_s23 }
 0x61d   : > { %v757_v50 = vpop.permute.xlu0 %756 }
 0x61e   : > { %v764_v51 = vmul.f32 %v757_v50, %v1904_v35 }
 0x620   : > { %v766_v52 = vsel %vm439_vm2, %v764_v51, 0.0 }
 0x621   : > { %v767_v53 = vrot.slane %v766_v52, 4  ;;  %v762_v54 = vpop.permute.xlu0 %761 }
 0x622   : > { %v765_v55 = vmul.f32 %v762_v54, %v1911_v39 }
 0x623   : > { %v768_v56 = vadd.f32 %v767_v53, %v766_v52 }
 0x624   : > { %v773_v57 = vsel %vm439_vm2, %v765_v55, 0.0 }
 0x625   : > { %v769_v58 = vrot.slane %v768_v56, 2  ;;  %v774_v59 = vrot.slane %v773_v57, 4  ;;  %v865_v60 = vpop.permute.xlu0 %864 }
 0x626   : > { %1263 = vmatmul.mubr.msk.f32.vlgmr.msra.gmra.mrb[2].mxu1 %vm439_vm2, %v865_v60  ;;  %1046 = vst.msk [vmem:[#allocation2] sm:$0x3] %vm1045_vm6, %v865_v60  ;;  %1047 = vst.msk [vmem:[#allocation12] sm:$0x3] %vm1045_vm6, %v865_v60 }
 0x627   : > { %v770_v61 = vadd.f32 %v769_v58, %v768_v56  ;;  %v775_v62 = vadd.f32 %v774_v59, %v773_v57 }
 0x629   : > { %v776_v35 = vrot.slane %v775_v62, 2  ;;  %v771_v63 = vrot.slane %v770_v61, 1 }
 0x62b   : > { %v777_v0 = vadd.f32 %v776_v35, %v775_v62  ;;  %v772_v2 = vadd.f32 %v771_v63, %v770_v61 }
 0x62d   : > { %v778_v1 = vrot.slane %v777_v0, 1 }
 0x62f   : > { %v779_v3 = vadd.f32 %v778_v1, %v777_v0 }
 0x631   : > { %v791_v39 = vsel %vm695_vm4, %v779_v3, %v772_v2 }
 0x632   : > { %1252 = vmatmul.mubr.msk.f32.vlgmr.msra.gmra.mrb[2].mxu0 %vm439_vm2, %v791_v39 }
 0x633   : > { %1273 = vmatprep.mubr.msk.f32.mxu0 %vm1617_vm1, %v1618_v10  ;;  %1302 = vmatpush3.bf16.msra.mxu0 %v1301_v8 }
 0x634   : > { %1303 = vmatprep.subr.bf16.mxu0 %v1616_v4 }
 0x637   : > { %1305 = vmatpush3.bf16.msra.mxu0 %v1304_v11 }
 0x6f9   : > { %v934_v10 = vpop.f32.mrb[2].mxu1 }
 0x6fa   : > { %v1264_v12 = vpop.f32.mrb[3].mxu1 }
 0x705   : > { %v860_v13 = vpop.f32.mrb[2].mxu0 }
 0x706   : > { %v935_v15 = vadd.f32 %v934_v10, %v860_v13  ;;  %v1253_v16 = vpop.f32.mrb[3].mxu0 }
 0x708   : > { %v945_v17 = vadd.f32 %v1187_v14, %v935_v15 }
 0x70a   : > { %1406 = vtanh.f32 %v945_v17 }
 0x714   : > { %v1407_v18 = vpop.eup %1406 }
 0x715   : > { %1274 = vmatmul.mubr.msk.f32.vlgmr.msra.gmra.mrb[4].mxu0 %vm439_vm2, %v1407_v18 }
 0x7e8   : > { %v1027_v20 = vpop.f32.mrb[4].mxu0 }
 0x7e9   : > { %v1028_v21 = vadd.f32 %v1188_v19, %v1027_v20  ;;  %v1275_v22 = vpop.f32.mrb[5].mxu0 }
 0x7eb   : > { %v1032_v23 = vsel %vm1031_vm7, %v1028_v21, -inf }
 0x7ec   : > { %1033 = vmax.xlane.f32.xlu1 %v1032_v23 }
 0x879   : > { %v1034_v4 = vpop.xlane.xlu1 %1033 }
 0x87a   : > { %v1035_v24 = vsub.f32 %v1028_v21, %v1034_v4 }
 0x87c   : > { %v1036_v25 = vmul.f32 1.442695, %v1035_v24 }
 0x87e   : > { %1408 = vpow2.f32 %v1036_v25 }
 0x888   : > { %v1409_v26 = vpop.eup %1408 }
 0x889   : > { %v1038_v27 = vsel %vm1031_vm7, %v1409_v26, 0.0 }
 0x88a   : > { %1039 = vadd.xlane.f32.xlu0 %v1038_v27 }
 0x88b   : > { %1521 = shalt.err (!%p1518_p3)
}
 0x88c   : > { %s1522_s20 = scalar_lea.hbm %s2069_s12, 32  ;;  %p2096_p6 = pmov %p2095_p1 }
 0x88d   : > { %p1523_p7 = scmp.ne.s32.totalorder %s2069_s12, %s1522_s20  ;;  %p1528_p10 = scmp.lt.u32.totalorder %s1522_s20, %s2069_s12 }
 0x88f   : > { %p1524_p5 = pnand %p1523_p7, %p2096_p6 }
 0x891   : > { %p1525_p11 = pneg %p1524_p5 }
 0x893   : > { %p1530_p4 = pnand %p1528_p10, %p1525_p11 }
 0x895   : > { %1533 = shalt.err (!%p1530_p4)
}
 0x896   : > { %p2097_p0 = pmov %p2095_p1  ;;  %s1191_s22 = sshll.u32 %s1715_s29, 5 }
 0x897   : > { %s1062_s15 = sshll.u32 %s406_s19, 4  ;;  %s2007_s20 = scalar_lea.hbm %s2068_s11, %s1191_s22  ;;  %s2009_s15 = int_to_ptr.vmem [resolvable:$true] %s1062_s15 }
 0x898   : > { %1320 = dma.vmem_to_hbm [thread:$0]  (%p2097_p0), %s1074_s16, 32, %s2069_s12, [#allocation13]  }
 0x899   : > { %s1049_s16 = scalar_lea.sflag [#allocation7], %s404_s24  ;;  %s1534_s25 = scalar_lea.vmem %s2009_s15, 32 }
 0x89a   : > { %p1535_p1 = scmp.ne.s32.totalorder %s2009_s15, %s1534_s25  ;;  %p2098_p2 = scmp.ne.s32.totalorder %s2083_s17, 0 }
 0x89b   : > { %s1625_s14 = smov [#allocation11]  }
 0x89c   : > { %p1536_p8 = pnand %p1535_p1, %p2098_p2  ;;  %s1538_s27 = sshll.u32 %s1625_s14, 4  ;;  %s1539_s27 = int_to_ptr.vmem [resolvable:$false] %s1538_s27 }
 0x89d   : > { %s1540_s21 = scalar_lea.vmem %s1539_s27, 64  ;;  %p1541_p12 = scmp.lt.s32.totalorder %s2009_s15, %s1539_s27 }
 0x89e   : > { %p1537_p9 = pneg %p1536_p8  ;;  %p1542_p13 = scmp.lt.s32.totalorder %s1540_s21, %s1534_s25 }
 0x8a0   : > { %p1543_p3 = por %p1542_p13, %p1541_p12 }
 0x8a2   : > { %p1544_p7 = pnand %p1543_p3, %p1537_p9 }
 0x917   : > { %v1040_v28 = vpop.xlane.xlu0 %1039 }
 0x918   : > { %1410 = vrcp.f32 %v1040_v28 }
 0x922   : > { %v1411_v29 = vpop.eup %1410 }
 0x923   : > { %v1042_v30 = vmul.f32 %v1411_v29, %v1409_v26 }
 0x925   : > { %1043 = vst [vmem:[%s406_s19] sm:$0x3] %v1042_v30 }
 0x926   : > { %1547 = shalt.err (!%p1544_p7)
}
 0x927   : > { %s1548_s24 = scalar_lea.hbm %s2007_s20, 32  ;;  %s1552_s26 = scalar_lea.hbm %s2068_s11, 192 }
 0x928   : > { %p1549_p6 = scmp.ne.s32.totalorder %s2007_s20, %s1548_s24  ;;  %p1553_p10 = scmp.lt.u32.totalorder %s2007_s20, %s2068_s11 }
 0x929   : > { %p1554_p4 = scmp.lt.u32.totalorder %s1552_s26, %s1548_s24  ;;  %p1556_p1 = scmp.lt.u32.totalorder %s1548_s24, %s2007_s20 }
 0x92a   : > { %p1550_p5 = pnand %p1549_p6, %p2098_p2 }
 0x92b   : > { %p1555_p0 = por %p1554_p4, %p1553_p10 }
 0x92c   : > { %p1551_p11 = pneg %p1550_p5 }
 0x92d   : > { %p1557_p8 = por %p1556_p1, %p1555_p0 }
 0x92f   : > { %p1558_p9 = pnand %p1557_p8, %p1551_p11 }
 0x931   : > { %1561 = shalt.err (!%p1558_p9)
}
 0x932   : > { %1318 = dma.vmem_to_hbm [thread:$0]  (%p2098_p2), %s2009_s15, 32, %s2007_s20, %s1049_s16  }
 0x933   : > { %p2099_p12 = scmp.eq.s32.totalorder %s1715_s29, 5 }
 0x935   : > { %1589 = dma.done.wait (%p2099_p12), [#allocation13], 32   ;;  %p2100_p13 = pmov %p2099_p12 }
 0x937   : > { %1591 = vsyncadd (%p2100_p13), [#allocation13], 4294967264 }
 0x938 PF: > { %s2101_s13 = sld [smem:[#allocation19_spill]]  ;;  %s2102_s23 = sld [smem:[#allocation23_spill]] }
 0x939   : > { %p1346_p3 = scmp.ge.s32.totalorder %s1610_s28, 2 }
 0x93e   : > { %s1089_s25 = sand.u32 1, %s2101_s13   ;;  %p2103_p7 = scmp.ne.s32.totalorder %s2102_s23, 0 }
 0x93f   : > { %s1090_s14 = scalar_lea.sflag [#allocation7], %s1089_s25 }
 0x940   : > { %p1335_p6 = pnand %p1346_p3, %p2103_p7 }
 0x942   : > { %1593 = dma.done.wait (!%p1335_p6), %s1090_s14, 32  }
 0x943   : > { %1595 = vsyncadd (!%p1335_p6), %s1090_s14, 4294967264  ;;  %s2104_s28 = sld [smem:[#allocation21_spill]]  ;;  %s2105_s17 = sld [smem:[#allocation20_spill]] }
 0x944   : > { %s2106_s27 = sld [smem:[#allocation22_spill]]  ;;  %s2107_s26 = smov %s1602_s0 }
 0x949   : > { %p32_p2 = scmp.ge.s32.totalorder %s2104_s28, 8   ;;  %s2108_s0 = smov %s2105_s17 }
 0x94b   :  { %34 = sbr.rel (!%p32_p2) target bundleno = 21 (0x15), region = 120 }
 0x952   :  { %1095 = vsyncpa [#allocation6], 1 }
 0x953   :  { %1097 = vsyncpa [#allocation6 + $0x1], 1 }
 0x954   :  { %1098 = vsyncpa [#allocation9], 1 }
 0x955   :  { %1099 = vsyncpa [#allocation7], 1 }
 0x956   :  { %1101 = vsyncpa [#allocation7 + $0x1], 1 }
 0x957   :  { %1102 = vsyncpa [#allocation13], 1 }

</bundles_post_ra>
